<compile_context>
chip_gen: v7x
topology: tpu7x:2x2x1
jax: 0.10.0
libtpu: 0.0.40
codegen_flags: <defaults>
</compile_context>

<pallas_src>
import functools

import jax
import jax.numpy as jnp
from jax.experimental import pallas as pl
from jax.experimental.pallas import tpu as pltpu


def _power_loss_kernel(pred_ref, targ_ref, o_ref, *, w0, w1, inv_n):
    i = pl.program_id(0)

    @pl.when(i == 0)
    def _init():
        o_ref[0, 0] = jnp.float32(0.0)

    p = pred_ref[...].astype(jnp.float32)
    t = targ_ref[...].astype(jnp.float32)
    one_m_p = 1.0 - p
    term = (w0 * (one_m_p * one_m_p * one_m_p) * t
            + w1 * (p * p * p) * (1.0 - t))
    o_ref[0, 0] += jnp.sum(term)

    @pl.when(i == pl.num_programs(0) - 1)
    def _finalize():
        o_ref[0, 0] = o_ref[0, 0] * jnp.float32(inv_n)


def power_loss(pred, targ, weights=(1.0, 1.0), *, block_rows=256):
    """Pallas equivalent of PowerLoss(weights)(pred, targ). Returns a scalar."""
    assert pred.shape == targ.shape
    assert len(weights) == 2
    n = pred.shape[0]

    p2 = pred.reshape(n, -1)
    t2 = targ.reshape(n, -1)
    R, C = p2.shape

    # Lane axis padded to a multiple of 128.
    C_pad = max(128, -(-C // 128) * 128)

    # Cap block rows so (2 inputs x 2 buffers x tm x C_pad x 4B) stays small
    # (<~16 MiB total), safe for v7x's 64 MiB VMEM as well as v5e/v6e.
    bytes_per_row = C_pad * 4
    vmem_rows = max(8, ((4 * 1024 * 1024) // bytes_per_row) // 8 * 8)
    r_up8 = -(-R // 8) * 8
    tm = max(8, (min(block_rows, vmem_rows, r_up8) // 8) * 8)
    R_pad = -(-R // tm) * tm
    grid = R_pad // tm

    # Zero padding is exact for this loss: pred=0, targ=0 contributes 0.
    if (R_pad, C_pad) != (R, C):
        p2 = jnp.pad(p2, ((0, R_pad - R), (0, C_pad - C)))
        t2 = jnp.pad(t2, ((0, R_pad - R), (0, C_pad - C)))

    kernel = functools.partial(
        _power_loss_kernel,
        w0=float(weights[0]),
        w1=float(weights[1]),
        inv_n=1.0 / float(n),
    )

    out = pl.pallas_call(
        kernel,
        out_shape=jax.ShapeDtypeStruct((1, 1), jnp.float32),
        grid=(grid,),
        in_specs=[
            pl.BlockSpec((tm, C_pad), lambda i: (i, 0)),
            pl.BlockSpec((tm, C_pad), lambda i: (i, 0)),
        ],
        out_specs=pl.BlockSpec(
            (1, 1), lambda i: (0, 0),
            memory_space=pltpu.MemorySpace.SMEM),
        compiler_params=pltpu.CompilerParams(
            # Reduction axis: output is a resident accumulator.
            dimension_semantics=("arbitrary",),
            vmem_limit_bytes=32 << 20,
        ),
    )(p2, t2)
    return out[0, 0]


if __name__ == "__main__":
    key = jax.random.PRNGKey(0)
    k1, k2 = jax.random.split(key)

    batch, channels, h, w = 2, 4, 16, 16
    pred = jax.random.uniform(k1, (batch, channels, h, w), jnp.float32)
    targ = (jax.random.uniform(k2, (batch, channels, h, w)) > 0.5).astype(
        jnp.float32)

    def ref_loss(pred, targ, weights):
        n = pred.shape[0]
        w0, w1 = weights
        return -1.0 / n * jnp.sum(
            -w0 * (1.0 - pred) ** 3 * targ - w1 * pred ** 3 * (1.0 - targ))

    # Default weights (1, 1).
    weights = (1.0, 1.0)
    loss = jax.block_until_ready(power_loss(pred, targ, weights))
    ref = ref_loss(pred, targ, weights)
    assert loss.shape == ()
    assert jnp.allclose(loss, ref, rtol=1e-4, atol=1e-4), (loss, ref)

    # Non-trivial weights.
    weights2 = (0.7, 1.3)
    loss2 = jax.block_until_ready(power_loss(pred, targ, weights2))
    ref2 = ref_loss(pred, targ, weights2)
    assert jnp.allclose(loss2, ref2, rtol=1e-4, atol=1e-4), (loss2, ref2)

    print("KERNEL_OK")
</pallas_src>

<mosaic_0001>
module attributes {stable_mosaic.version = 11 : i64} {
  func.func @_power_loss_kernel(%arg0: i32, %arg1: memref<8x1024xf32, #tpu.memory_space<vmem>>, %arg2: memref<8x1024xf32, #tpu.memory_space<vmem>>, %arg3: memref<1x1xf32, #tpu.memory_space<smem>>) attributes {dimension_semantics = [#tpu.dimension_semantics<arbitrary>], iteration_bounds = array<i64: 1>, scalar_prefetch = 0 : i64, scratch_operands = 0 : i64, tpu.core_type = #tpu.core_type<tc>, window_params = [{transform_indices = @transform_0, window_bounds = array<i64: 8, 1024>}, {transform_indices = @transform_1, window_bounds = array<i64: 8, 1024>}, {transform_indices = @transform_2, window_bounds = array<i64: 1, 1>}]} {
    %c0_i32 = arith.constant 0 : i32
    %0 = arith.cmpi eq, %arg0, %c0_i32 : i32
    %1 = arith.extui %0 : i1 to i32
    %c0_i32_0 = arith.constant 0 : i32
    %2 = arith.cmpi ne, %1, %c0_i32_0 : i32
    scf.if %2 {
      %cst_14 = arith.constant 0.000000e+00 : f32
      %c0_15 = arith.constant 0 : index
      %c0_16 = arith.constant 0 : index
      %30 = memref.load %arg3[%c0_15, %c0_16] : memref<1x1xf32, #tpu.memory_space<smem>>
      memref.store %cst_14, %arg3[%c0_15, %c0_16] : memref<1x1xf32, #tpu.memory_space<smem>>
    } else {
    }
    %c0 = arith.constant 0 : index
    %c0_1 = arith.constant 0 : index
    %3 = vector.load %arg1[%c0, %c0_1] : memref<8x1024xf32, #tpu.memory_space<vmem>>, vector<8x1024xf32>
    %c0_2 = arith.constant 0 : index
    %c0_3 = arith.constant 0 : index
    %4 = vector.load %arg2[%c0_2, %c0_3] : memref<8x1024xf32, #tpu.memory_space<vmem>>, vector<8x1024xf32>
    %cst = arith.constant 1.000000e+00 : f32
    %5 = vector.broadcast %cst : f32 to vector<8x1024xf32>
    %6 = arith.subf %5, %3 : vector<8x1024xf32>
    %7 = arith.mulf %6, %6 : vector<8x1024xf32>
    %8 = arith.mulf %7, %6 : vector<8x1024xf32>
    %cst_4 = arith.constant 1.000000e+00 : f32
    %9 = vector.broadcast %cst_4 : f32 to vector<8x1024xf32>
    %10 = arith.mulf %9, %8 : vector<8x1024xf32>
    %11 = arith.mulf %10, %4 : vector<8x1024xf32>
    %12 = arith.mulf %3, %3 : vector<8x1024xf32>
    %13 = arith.mulf %12, %3 : vector<8x1024xf32>
    %cst_5 = arith.constant 1.000000e+00 : f32
    %14 = vector.broadcast %cst_5 : f32 to vector<8x1024xf32>
    %15 = arith.mulf %14, %13 : vector<8x1024xf32>
    %cst_6 = arith.constant 1.000000e+00 : f32
    %16 = vector.broadcast %cst_6 : f32 to vector<8x1024xf32>
    %17 = arith.subf %16, %4 : vector<8x1024xf32>
    %18 = arith.mulf %15, %17 : vector<8x1024xf32>
    %19 = arith.addf %11, %18 : vector<8x1024xf32>
    %c0_7 = arith.constant 0 : index
    %c0_8 = arith.constant 0 : index
    %20 = memref.load %arg3[%c0_7, %c0_8] : memref<1x1xf32, #tpu.memory_space<smem>>
    %21 = vector.shape_cast %19 : vector<8x1024xf32> to vector<1x8x1024xf32>
    %cst_9 = arith.constant dense<0.000000e+00> : vector<1xf32>
    %22 = vector.multi_reduction <add>, %21, %cst_9 [1, 2] : vector<1x8x1024xf32> to vector<1xf32>
    %23 = vector.shape_cast %22 : vector<1xf32> to vector<1x1x1xf32>
    %24 = vector.extract %23[0, 0, 0] : f32 from vector<1x1x1xf32>
    %25 = arith.addf %20, %24 : f32
    %c0_10 = arith.constant 0 : index
    %c0_11 = arith.constant 0 : index
    %26 = memref.load %arg3[%c0_10, %c0_11] : memref<1x1xf32, #tpu.memory_space<smem>>
    memref.store %25, %arg3[%c0_10, %c0_11] : memref<1x1xf32, #tpu.memory_space<smem>>
    %c0_i32_12 = arith.constant 0 : i32
    %27 = arith.cmpi eq, %arg0, %c0_i32_12 : i32
    %28 = arith.extui %27 : i1 to i32
    %c0_i32_13 = arith.constant 0 : i32
    %29 = arith.cmpi ne, %28, %c0_i32_13 : i32
    scf.if %29 {
      %c0_14 = arith.constant 0 : index
      %c0_15 = arith.constant 0 : index
      %30 = memref.load %arg3[%c0_14, %c0_15] : memref<1x1xf32, #tpu.memory_space<smem>>
      %cst_16 = arith.constant 5.000000e-01 : f32
      %31 = arith.mulf %30, %cst_16 : f32
      %c0_17 = arith.constant 0 : index
      %c0_18 = arith.constant 0 : index
      %32 = memref.load %arg3[%c0_17, %c0_18] : memref<1x1xf32, #tpu.memory_space<smem>>
      memref.store %31, %arg3[%c0_17, %c0_18] : memref<1x1xf32, #tpu.memory_space<smem>>
    } else {
    }
    return
  }
  func.func @transform_0(%arg0: i32) -> (i32, i32) {
    %c0_i32 = arith.constant 0 : i32
    %c0_i32_0 = arith.constant 0 : i32
    return %arg0, %c0_i32 : i32, i32
  }
  func.func @transform_1(%arg0: i32) -> (i32, i32) {
    %c0_i32 = arith.constant 0 : i32
    %c0_i32_0 = arith.constant 0 : i32
    return %arg0, %c0_i32 : i32, i32
  }
  func.func @transform_2(%arg0: i32) -> (i32, i32) {
    %c0_i32 = arith.constant 0 : i32
    %c0_i32_0 = arith.constant 0 : i32
    %c0_i32_1 = arith.constant 0 : i32
    return %c0_i32, %c0_i32_0 : i32, i32
  }
}

</mosaic_0001>

<bundles_post_ra>
// kernel: tpu_custom_call.1
= control target key start
LH: loop header
LB: loop body
LE: loop exit
PB: predicated region body
PF: predicated region fallthrough
CT: control target
= control target key end

     0   :  { %7 = vsyncpa [#allocation3], 0  ;;  %s297_s0 = inlined_call_operand.hbm [shape: f32[8,1024], index: 0, kind: input, shape index: {}]   ;;  %s298_s1 = inlined_call_operand.hbm [shape: f32[8,1024], index: 1, kind: input, shape index: {}]   ;;  %s299_s2 = inlined_call_operand.hbm [shape: f32[1,1], index: 2, kind: output, shape index: {}]  }
   0x1   :  { %8 = vsyncpa [#allocation6], 0 }
   0x2   :  { %9 = vsyncpa [#allocation4], 0  ;;  %s237_s9 = smov [#allocation2]   ;;  %s238_s11 = smov [#allocation5]  }
   0x3   :  { %s16_s10 = sshll.u32 %s237_s9, 4  ;;  %s26_s12 = sshll.u32 %s238_s11, 4  ;;  %s17_s10 = int_to_ptr.vmem [resolvable:$true] %s16_s10  ;;  %s27_s12 = int_to_ptr.vmem [resolvable:$true] %s26_s12 }
   0x4   :  { %s177_s15 = scalar_lea.hbm %s297_s0, 1024 }
   0x5   :  { %p178_p0 = scmp.ne.s32.totalorder %s297_s0, %s177_s15  ;;  %p181_p1 = scmp.lt.u32.totalorder %s177_s15, %s297_s0 }
   0x7   :  { %p183_p2 = pnand %p181_p1, %p178_p0 }
   0x9   :  { %186 = shalt.err (!%p183_p2)
}
   0xa   :  { %s187_s20 = scalar_lea.vmem %s17_s10, 1024  ;;  %p192_p4 = scmp.lt.s32.totalorder %s17_s10, %s17_s10 }
   0xb   :  { %p188_p3 = scmp.ne.s32.totalorder %s17_s10, %s187_s20  ;;  %p193_p5 = scmp.lt.s32.totalorder %s187_s20, %s187_s20 }
   0xd   :  { %p194_p6 = por %p193_p5, %p192_p4 }
   0xf   :  { %p195_p7 = pnand %p194_p6, %p188_p3 }
  0x11   :  { %198 = shalt.err (!%p195_p7)
}
  0x12   :  { %19 = dma.hbm_to_vmem [thread:$0]  %s297_s0, 1024, %s17_s10, [#allocation3]  }
  0x13   :  { %s199_s25 = scalar_lea.hbm %s298_s1, 1024 }
  0x14   :  { %p200_p8 = scmp.ne.s32.totalorder %s298_s1, %s199_s25  ;;  %p203_p9 = scmp.lt.u32.totalorder %s199_s25, %s298_s1 }
  0x16   :  { %p205_p10 = pnand %p203_p9, %p200_p8 }
  0x18   :  { %208 = shalt.err (!%p205_p10)
}
  0x19   :  { %s209_s30 = scalar_lea.vmem %s27_s12, 1024  ;;  %p214_p12 = scmp.lt.s32.totalorder %s27_s12, %s27_s12 }
  0x1a   :  { %p210_p11 = scmp.ne.s32.totalorder %s27_s12, %s209_s30  ;;  %p215_p13 = scmp.lt.s32.totalorder %s209_s30, %s209_s30 }
  0x1c   :  { %p216_p0 = por %p215_p13, %p214_p12 }
  0x1e   :  { %p217_p1 = pnand %p216_p0, %p210_p11 }
  0x20   :  { %220 = shalt.err (!%p217_p1)
}
  0x21   :  { %29 = dma.hbm_to_vmem [thread:$0]  %s298_s1, 1024, %s27_s12, [#allocation6]  }
  0x22   :  { %231 = dma.done.wait [#allocation3], 1024  }
  0x23   :  { %232 = vsyncadd [#allocation3], 4294966272 }
  0x24   :  { %233 = dma.done.wait [#allocation6], 1024  }
  0x25   :  { %234 = vsyncadd [#allocation6], 4294966272  ;;  %v42_v0 = vld [vmem:[#allocation2] sm:$0xff]  ;;  %v43_v1 = vld [vmem:[#allocation2 + $0x8] sm:$0xff]  ;;  %s221_s7 = scalar_lea.hbm %s299_s2, 16 }
  0x26   :  { %v44_v2 = vld [vmem:[#allocation2 + $0x10] sm:$0xff]  ;;  %v45_v3 = vld [vmem:[#allocation2 + $0x18] sm:$0xff]  ;;  %v46_v4 = vld [vmem:[#allocation2 + $0x20] sm:$0xff]  ;;  %v58_v6 = vsub.f32 1.0, %v42_v0  ;;  %v59_v7 = vsub.f32 1.0, %v43_v1  ;;  %v90_v24 = vmul.f32 %v42_v0, %v42_v0  ;;  %v91_v25 = vmul.f32 %v43_v1, %v43_v1  ;;  %p222_p2 = scmp.ne.s32.totalorder %s299_s2, %s221_s7  ;;  %p225_p3 = scmp.lt.u32.totalorder %s221_s7, %s299_s2 }
  0x27   :  { %v47_v5 = vld [vmem:[#allocation2 + $0x28] sm:$0xff]  ;;  %v60_v8 = vsub.f32 1.0, %v44_v2  ;;  %v48_v9 = vld [vmem:[#allocation2 + $0x30] sm:$0xff]  ;;  %v279_v10 = vld [vmem:[#allocation2 + $0x38] sm:$0xff]  ;;  %v61_v11 = vsub.f32 1.0, %v45_v3  ;;  %v62_v12 = vsub.f32 1.0, %v46_v4  ;;  %v92_v34 = vmul.f32 %v44_v2, %v44_v2 }
  0x28   :  { %v63_v13 = vsub.f32 1.0, %v47_v5  ;;  %v66_v14 = vmul.f32 %v58_v6, %v58_v6  ;;  %v67_v15 = vmul.f32 %v59_v7, %v59_v7  ;;  %v64_v16 = vsub.f32 1.0, %v48_v9  ;;  %v50_v30 = vld [vmem:[#allocation5] sm:$0xff]  ;;  %v51_v31 = vld [vmem:[#allocation5 + $0x8] sm:$0xff]  ;;  %v52_v36 = vld [vmem:[#allocation5 + $0x10] sm:$0xff]  ;;  %p227_p4 = pnand %p225_p3, %p222_p2 }
  0x29   :  { %v65_v17 = vsub.f32 1.0, %v279_v10  ;;  %v68_v18 = vmul.f32 %v60_v8, %v60_v8  ;;  %v69_v19 = vmul.f32 %v61_v11, %v61_v11  ;;  %v70_v20 = vmul.f32 %v62_v12, %v62_v12  ;;  %v53_v37 = vld [vmem:[#allocation5 + $0x18] sm:$0xff]  ;;  %v54_v42 = vld [vmem:[#allocation5 + $0x20] sm:$0xff]  ;;  %v55_v43 = vld [vmem:[#allocation5 + $0x28] sm:$0xff] }
  0x2a   :  { %v71_v21 = vmul.f32 %v63_v13, %v63_v13  ;;  %v74_v22 = vmul.f32 %v66_v14, %v58_v6  ;;  %v75_v23 = vmul.f32 %v67_v15, %v59_v7  ;;  %v72_v26 = vmul.f32 %v64_v16, %v64_v16  ;;  %v56_v52 = vld [vmem:[#allocation5 + $0x30] sm:$0xff] }
  0x2b   :  { %v73_v27 = vmul.f32 %v65_v17, %v65_v17  ;;  %v76_v28 = vmul.f32 %v68_v18, %v60_v8  ;;  %v77_v29 = vmul.f32 %v69_v19, %v61_v11  ;;  %v78_v32 = vmul.f32 %v70_v20, %v62_v12 }
  0x2c   :  { %v79_v33 = vmul.f32 %v71_v21, %v63_v13  ;;  %v93_v35 = vmul.f32 %v45_v3, %v45_v3  ;;  %v82_v38 = vmul.f32 %v74_v22, %v50_v30  ;;  %v83_v39 = vmul.f32 %v75_v23, %v51_v31 }
  0x2d   :  { %v94_v40 = vmul.f32 %v46_v4, %v46_v4  ;;  %v95_v41 = vmul.f32 %v47_v5, %v47_v5  ;;  %v98_v44 = vmul.f32 %v90_v24, %v42_v0  ;;  %v99_v45 = vmul.f32 %v91_v25, %v43_v1  ;;  %v57_v1 = vld [vmem:[#allocation5 + $0x38] sm:$0xff] }
  0x2e   :  { %v100_v46 = vmul.f32 %v92_v34, %v44_v2  ;;  %v101_v47 = vmul.f32 %v93_v35, %v45_v3  ;;  %v84_v48 = vmul.f32 %v76_v28, %v52_v36  ;;  %v85_v49 = vmul.f32 %v77_v29, %v53_v37 }
  0x2f   :  { %v96_v50 = vmul.f32 %v48_v9, %v48_v9  ;;  %v102_v51 = vmul.f32 %v94_v40, %v46_v4  ;;  %v106_v53 = vsub.f32 1.0, %v50_v30  ;;  %v107_v54 = vsub.f32 1.0, %v51_v31 }
  0x30   :  { %v108_v55 = vsub.f32 1.0, %v52_v36  ;;  %v109_v56 = vsub.f32 1.0, %v53_v37  ;;  %v97_v57 = vmul.f32 %v279_v10, %v279_v10  ;;  %v103_v58 = vmul.f32 %v95_v41, %v47_v5 }
  0x31   :  { %v110_v59 = vsub.f32 1.0, %v54_v42  ;;  %v111_v60 = vsub.f32 1.0, %v55_v43  ;;  %v114_v61 = vmul.f32 %v106_v53, %v98_v44  ;;  %v115_v62 = vmul.f32 %v107_v54, %v99_v45 }
  0x32   :  { %v116_v63 = vmul.f32 %v108_v55, %v100_v46  ;;  %v117_v0 = vmul.f32 %v109_v56, %v101_v47  ;;  %v80_v2 = vmul.f32 %v72_v26, %v64_v16  ;;  %v86_v3 = vmul.f32 %v78_v32, %v54_v42 }
  0x33   :  { %v104_v6 = vmul.f32 %v96_v50, %v48_v9  ;;  %v112_v4 = vsub.f32 1.0, %v56_v52  ;;  %v118_v7 = vmul.f32 %v110_v59, %v102_v51  ;;  %v122_v8 = vadd.f32 %v114_v61, %v82_v38 }
  0x34   :  { %v123_v11 = vadd.f32 %v115_v62, %v83_v39  ;;  %v124_v12 = vadd.f32 %v116_v63, %v84_v48  ;;  %v81_v13 = vmul.f32 %v73_v27, %v65_v17  ;;  %v87_v14 = vmul.f32 %v79_v33, %v55_v43 }
  0x35   :  { %v105_v15 = vmul.f32 %v97_v57, %v279_v10  ;;  %v113_v5 = vsub.f32 1.0, %v57_v1  ;;  %v119_v18 = vmul.f32 %v111_v60, %v103_v58  ;;  %v125_v19 = vadd.f32 %v117_v0, %v85_v49 }
  0x36   :  { %v131_v20 = vadd.f32 %v123_v11, %v122_v8  ;;  %v88_v21 = vmul.f32 %v80_v2, %v56_v52  ;;  %v120_v22 = vmul.f32 %v112_v4, %v104_v6  ;;  %v126_v23 = vadd.f32 %v118_v7, %v86_v3 }
  0x37   :  { %v89_v16 = vmul.f32 %v81_v13, %v57_v1  ;;  %v121_v25 = vmul.f32 %v113_v5, %v105_v15  ;;  %v127_v9 = vadd.f32 %v119_v18, %v87_v14 }
  0x38   :  { %v132_v24 = vadd.f32 %v131_v20, %v124_v12  ;;  %v128_v28 = vadd.f32 %v120_v22, %v88_v21 }
  0x39   :  { %v129_v30 = vadd.f32 %v121_v25, %v89_v16 }
  0x3a   :  { %v133_v26 = vadd.f32 %v132_v24, %v125_v19 }
  0x3c   :  { %v134_v29 = vadd.f32 %v133_v26, %v126_v23 }
  0x3e   :  { %v135_v31 = vadd.f32 %v134_v29, %v127_v9 }
  0x40   :  { %v136_v17 = vadd.f32 %v135_v31, %v128_v28 }
  0x42   :  { %v137_v27 = vadd.f32 %v136_v17, %v129_v30 }
  0x44   :  { %138 = vadd.xlane.f32.xlu0 %v137_v27 }
  0xd1   :  { %v139_v10 = vpop.xlane.xlu0 %138 }
  0xd2   :  { %v140_v32 = vrot.slane %v139_v10, 4 }
  0xd4   :  { %v141_v33 = vadd.f32 %v140_v32, %v139_v10 }
  0xd6   :  { %v142_v34 = vrot.slane %v141_v33, 2 }
  0xd8   :  { %v143_v35 = vadd.f32 %v142_v34, %v141_v33 }
  0xda   :  { %v144_v36 = vrot.slane %v143_v35, 1 }
  0xdc   :  { %v145_v37 = vadd.f32 %v144_v36, %v143_v35 }
  0xde   :  { %171 = vpush %v145_v37 }
 0x10f   :  { %s172_s1 = spop %171 }
 0x110   :  { %s154_s4 = smul.f32 0.5, %s172_s1 }
 0x112   :  { %155 = sst [smem:[#allocation7]] %s154_s4 }
 0x113   :  { %230 = shalt.err (!%p227_p4)
}
 0x114   :  { %s239_s12 = smov [#allocation7]  }
 0x115   :  { %163 = dma.smem_to_hbm %s239_s12, 16, %s299_s2, [#allocation4]  }
 0x116   :  { %235 = dma.done.wait [#allocation4], 16  }
 0x117   :  { %236 = vsyncadd [#allocation4], 4294967280 }
 0x118   :  { %167 = sfence }
 0x119   :  { %168 = vsyncpa [#allocation3], 1 }
 0x11a   :  { %169 = vsyncpa [#allocation6], 1 }
 0x11b   :  { %170 = vsyncpa [#allocation4], 1 }

</bundles_post_ra>
